<compile_context>
chip_gen: v7x
topology: tpu7x:2x2x1
jax: 0.10.0
libtpu: 0.0.40
codegen_flags: <defaults>
</compile_context>

<pallas_src>
import functools

import jax
import jax.numpy as jnp
from jax import lax
from jax.experimental import pallas as pl
from jax.experimental.pallas import tpu as pltpu


def _make_kernel(C, bblk, W, H, mxu_dtype, approx_recip):
    def kernel(w_ref, x_ref, o_ref):
        # w_ref: SMEM (3*C,)        flat [wq | wk | wv]
        # x_ref: VMEM (C, bblk, W, H)  input images, already in (W, H) order
        # o_ref: VMEM (bblk, W, H)     output attention maps
        zeros = jnp.zeros((bblk, W, H), jnp.float32)

        # 1x1 conv (C -> 1) == per-channel scalar-weighted sum.  fori_loop keeps
        # code size / vreg pressure flat in C (scales past the test's C=4).
        def proj(c, carry):
            q, k, v = carry
            xc = x_ref[c].astype(jnp.float32)          # (bblk, W, H)
            return (q + w_ref[c] * xc,
                    k + w_ref[C + c] * xc,
                    v + w_ref[2 * C + c] * xc)

        q_t, k_t, v_t = lax.fori_loop(0, C, proj, (zeros, zeros, zeros),
                                      unroll=min(C, 8))

        qh = q_t.astype(mxu_dtype)
        kh = k_t.astype(mxu_dtype)
        # scores[b, w, u] = sum_h q_t[b, w, h] * k_t[b, u, h]   (MXU, NT form)
        scores = jnp.einsum('bwh,buh->bwu', qh, kh,
                            preferred_element_type=jnp.float32)

        # numerically stable softmax over the last axis (f32)
        m = jnp.max(scores, axis=-1, keepdims=True)
        e = jnp.exp(scores - m)
        denom = jnp.sum(e, axis=-1, keepdims=True)
        alpha = e * pl.reciprocal(denom, approx=approx_recip)

        # out[b, w, h] = sum_u alpha[b, w, u] * v_t[b, u, h]    (MXU, NN form)
        attn = jnp.einsum('bwu,buh->bwh', alpha.astype(mxu_dtype),
                          v_t.astype(mxu_dtype),
                          preferred_element_type=jnp.float32)
        # residual added exactly in f32
        o_ref[...] = (attn + v_t).astype(o_ref.dtype)

    return kernel


def _pick_bblk(B, C, H, W, itemsize=4, vmem_target=1 << 21):
    """Images per grid step: amortize per-step overhead without blowing VMEM/vregs."""
    per_img_bytes = (C + 1) * W * H * itemsize
    cap = max(1, vmem_target // per_img_bytes)
    # q/k/v each occupy ~ceil(W/8)*ceil(H/128) vregs per image; keep 3 maps well
    # under the 64-vreg file to avoid heavy spilling of the small padded tiles.
    vregs_per_map = (-(-W // 8)) * (-(-H // 128))
    cap = min(cap, max(1, 32 // (3 * vregs_per_map)))
    if B >= 2:
        cap = min(cap, B // 2)   # keep >= 2 grid steps so both v7x TCs get work
    cap = max(1, min(cap, B))
    for bb in range(cap, 0, -1):
        if B % bb == 0:
            return bb
    return 1


@functools.partial(jax.jit, static_argnames=("mxu_dtype",))
def spatial_attention(x, wq, wk, wv, mxu_dtype=jnp.bfloat16):
    """x: (B, C, H, W); wq/wk/wv: (C,) 1x1-conv weights. Returns (B, 1, W, H)."""
    B, C, H, W = x.shape
    # flat 1-D SMEM weight table (avoids 2-D SMEM padding)
    w = jnp.concatenate([wq, wk, wv]).astype(jnp.float32)        # (3*C,)
    # layout plumbing in the wrapper: channels leading (cheap dynamic ref index
    # in the kernel) and spatial pre-swapped to (W, H) so the kernel needs no
    # XLU transposes at all.
    x_t = jnp.transpose(x, (1, 0, 3, 2))                         # (C, B, W, H)

    bblk = _pick_bblk(B, C, H, W, itemsize=x.dtype.itemsize)
    approx_recip = (mxu_dtype is not jnp.float32)
    kernel = _make_kernel(C, bblk, W, H, mxu_dtype, approx_recip)

    out = pl.pallas_call(
        kernel,
        out_shape=jax.ShapeDtypeStruct((B, W, H), x.dtype),
        grid_spec=pltpu.PrefetchScalarGridSpec(
            num_scalar_prefetch=0,
            grid=(B // bblk,),
            in_specs=[
                pl.BlockSpec(memory_space=pltpu.MemorySpace.SMEM),       # weights
                pl.BlockSpec((C, bblk, W, H), lambda b: (0, b, 0, 0)),   # images
            ],
            out_specs=pl.BlockSpec((bblk, W, H), lambda b: (b, 0, 0)),
        ),
        compiler_params=pltpu.CompilerParams(
            dimension_semantics=("parallel",),
            vmem_limit_bytes=32 * 1024 * 1024,
        ),
    )(w, x_t)
    return out[:, None]                                          # (B, 1, W, H)


def spatial_attention_reference(x, wq, wk, wv, mxu_dtype=jnp.float32):
    q = jnp.einsum('bchw,c->bhw', x, wq)
    k = jnp.einsum('bchw,c->bhw', x, wk)
    v = jnp.einsum('bchw,c->bhw', x, wv)
    qt = jnp.swapaxes(q, -2, -1)                                 # (B, W, H)
    kt = jnp.swapaxes(k, -2, -1)
    vt = jnp.swapaxes(v, -2, -1)
    scores = jnp.einsum('bwh,buh->bwu', qt.astype(mxu_dtype), kt.astype(mxu_dtype),
                        preferred_element_type=jnp.float32)      # (B, W, W)
    alpha = jax.nn.softmax(scores, axis=-1)
    out = jnp.einsum('bwu,buh->bwh', alpha.astype(mxu_dtype), vt.astype(mxu_dtype),
                     preferred_element_type=jnp.float32) + vt    # (B, W, H)
    return out[:, None]                                          # (B, 1, W, H)


if __name__ == "__main__":
    key = jax.random.PRNGKey(0)
    kx, kq, kk, kv = jax.random.split(key, 4)
    B, C, H, W = 2, 4, 16, 16
    x = jax.random.normal(kx, (B, C, H, W), dtype=jnp.float32)
    wq = 0.5 * jax.random.normal(kq, (C,), dtype=jnp.float32)
    wk = 0.5 * jax.random.normal(kk, (C,), dtype=jnp.float32)
    wv = 0.5 * jax.random.normal(kv, (C,), dtype=jnp.float32)

    # Production path: bf16 MXU matmuls + approximate-reciprocal softmax.
    out_bf16 = spatial_attention(x, wq, wk, wv)
    jax.block_until_ready(out_bf16)
    assert out_bf16.shape == (B, 1, W, H), out_bf16.shape
    ref_bf16 = spatial_attention_reference(x, wq, wk, wv, mxu_dtype=jnp.bfloat16)
    assert jnp.allclose(out_bf16, ref_bf16, atol=5e-2, rtol=5e-2), \
        float(jnp.max(jnp.abs(out_bf16 - ref_bf16)))

    # Full-precision parity path against the exact f32 reference.
    out_f32 = spatial_attention(x, wq, wk, wv, mxu_dtype=jnp.float32)
    jax.block_until_ready(out_f32)
    ref_f32 = spatial_attention_reference(x, wq, wk, wv)
    assert out_f32.shape == (B, 1, W, H), out_f32.shape
    assert jnp.allclose(out_f32, ref_f32, atol=2e-3, rtol=2e-3), \
        float(jnp.max(jnp.abs(out_f32 - ref_f32)))

    print("KERNEL_OK")
</pallas_src>

<mosaic_0001>
module attributes {stable_mosaic.version = 11 : i64} {
  func.func @kernel(%arg0: i32, %arg1: memref<12xf32, #tpu.memory_space<smem>>, %arg2: memref<4x1x16x16xf32, #tpu.memory_space<vmem>>, %arg3: memref<1x16x16xf32, #tpu.memory_space<vmem>>) attributes {dimension_semantics = [#tpu.dimension_semantics<parallel>], iteration_bounds = array<i64: 2>, scalar_prefetch = 0 : i64, scratch_operands = 0 : i64, tpu.core_type = #tpu.core_type<tc>, window_params = [{transform_indices = @transform_0, window_bounds = array<i64: 12>}, {transform_indices = @transform_1, window_bounds = array<i64: 4, 1, 16, 16>}, {transform_indices = @transform_2, window_bounds = array<i64: 1, 16, 16>}]} {
    %cst = arith.constant 0.000000e+00 : f32
    %0 = vector.broadcast %cst : f32 to vector<1x16x16xf32>
    %c0_i32 = arith.constant 0 : i32
    %1 = arith.index_cast %c0_i32 : i32 to index
    %c0 = arith.constant 0 : index
    %c0_0 = arith.constant 0 : index
    %c0_1 = arith.constant 0 : index
    %2 = vector.load %arg2[%1, %c0, %c0_0, %c0_1] : memref<4x1x16x16xf32, #tpu.memory_space<vmem>>, vector<1x1x16x16xf32>
    %3 = vector.shape_cast %2 : vector<1x1x16x16xf32> to vector<1x16x16xf32>
    %4 = arith.index_cast %c0_i32 : i32 to index
    %5 = memref.load %arg1[%4] : memref<12xf32, #tpu.memory_space<smem>>
    %6 = vector.broadcast %5 : f32 to vector<1x16x16xf32>
    %7 = arith.mulf %6, %3 : vector<1x16x16xf32>
    %8 = arith.addf %0, %7 : vector<1x16x16xf32>
    %c4_i32 = arith.constant 4 : i32
    %9 = arith.addi %c4_i32, %c0_i32 : i32
    %10 = arith.index_cast %9 : i32 to index
    %11 = memref.load %arg1[%10] : memref<12xf32, #tpu.memory_space<smem>>
    %12 = vector.broadcast %11 : f32 to vector<1x16x16xf32>
    %13 = arith.mulf %12, %3 : vector<1x16x16xf32>
    %14 = arith.addf %0, %13 : vector<1x16x16xf32>
    %c8_i32 = arith.constant 8 : i32
    %15 = arith.addi %c8_i32, %c0_i32 : i32
    %16 = arith.index_cast %15 : i32 to index
    %17 = memref.load %arg1[%16] : memref<12xf32, #tpu.memory_space<smem>>
    %18 = vector.broadcast %17 : f32 to vector<1x16x16xf32>
    %19 = arith.mulf %18, %3 : vector<1x16x16xf32>
    %20 = arith.addf %0, %19 : vector<1x16x16xf32>
    %c1_i32 = arith.constant 1 : i32
    %21 = arith.index_cast %c1_i32 : i32 to index
    %c0_2 = arith.constant 0 : index
    %c0_3 = arith.constant 0 : index
    %c0_4 = arith.constant 0 : index
    %22 = vector.load %arg2[%21, %c0_2, %c0_3, %c0_4] : memref<4x1x16x16xf32, #tpu.memory_space<vmem>>, vector<1x1x16x16xf32>
    %23 = vector.shape_cast %22 : vector<1x1x16x16xf32> to vector<1x16x16xf32>
    %24 = arith.index_cast %c1_i32 : i32 to index
    %25 = memref.load %arg1[%24] : memref<12xf32, #tpu.memory_space<smem>>
    %26 = vector.broadcast %25 : f32 to vector<1x16x16xf32>
    %27 = arith.mulf %26, %23 : vector<1x16x16xf32>
    %28 = arith.addf %8, %27 : vector<1x16x16xf32>
    %c4_i32_5 = arith.constant 4 : i32
    %29 = arith.addi %c4_i32_5, %c1_i32 : i32
    %30 = arith.index_cast %29 : i32 to index
    %31 = memref.load %arg1[%30] : memref<12xf32, #tpu.memory_space<smem>>
    %32 = vector.broadcast %31 : f32 to vector<1x16x16xf32>
    %33 = arith.mulf %32, %23 : vector<1x16x16xf32>
    %34 = arith.addf %14, %33 : vector<1x16x16xf32>
    %c8_i32_6 = arith.constant 8 : i32
    %35 = arith.addi %c8_i32_6, %c1_i32 : i32
    %36 = arith.index_cast %35 : i32 to index
    %37 = memref.load %arg1[%36] : memref<12xf32, #tpu.memory_space<smem>>
    %38 = vector.broadcast %37 : f32 to vector<1x16x16xf32>
    %39 = arith.mulf %38, %23 : vector<1x16x16xf32>
    %40 = arith.addf %20, %39 : vector<1x16x16xf32>
    %c2_i32 = arith.constant 2 : i32
    %41 = arith.index_cast %c2_i32 : i32 to index
    %c0_7 = arith.constant 0 : index
    %c0_8 = arith.constant 0 : index
    %c0_9 = arith.constant 0 : index
    %42 = vector.load %arg2[%41, %c0_7, %c0_8, %c0_9] : memref<4x1x16x16xf32, #tpu.memory_space<vmem>>, vector<1x1x16x16xf32>
    %43 = vector.shape_cast %42 : vector<1x1x16x16xf32> to vector<1x16x16xf32>
    %44 = arith.index_cast %c2_i32 : i32 to index
    %45 = memref.load %arg1[%44] : memref<12xf32, #tpu.memory_space<smem>>
    %46 = vector.broadcast %45 : f32 to vector<1x16x16xf32>
    %47 = arith.mulf %46, %43 : vector<1x16x16xf32>
    %48 = arith.addf %28, %47 : vector<1x16x16xf32>
    %c4_i32_10 = arith.constant 4 : i32
    %49 = arith.addi %c4_i32_10, %c2_i32 : i32
    %50 = arith.index_cast %49 : i32 to index
    %51 = memref.load %arg1[%50] : memref<12xf32, #tpu.memory_space<smem>>
    %52 = vector.broadcast %51 : f32 to vector<1x16x16xf32>
    %53 = arith.mulf %52, %43 : vector<1x16x16xf32>
    %54 = arith.addf %34, %53 : vector<1x16x16xf32>
    %c8_i32_11 = arith.constant 8 : i32
    %55 = arith.addi %c8_i32_11, %c2_i32 : i32
    %56 = arith.index_cast %55 : i32 to index
    %57 = memref.load %arg1[%56] : memref<12xf32, #tpu.memory_space<smem>>
    %58 = vector.broadcast %57 : f32 to vector<1x16x16xf32>
    %59 = arith.mulf %58, %43 : vector<1x16x16xf32>
    %60 = arith.addf %40, %59 : vector<1x16x16xf32>
    %c3_i32 = arith.constant 3 : i32
    %61 = arith.index_cast %c3_i32 : i32 to index
    %c0_12 = arith.constant 0 : index
    %c0_13 = arith.constant 0 : index
    %c0_14 = arith.constant 0 : index
    %62 = vector.load %arg2[%61, %c0_12, %c0_13, %c0_14] : memref<4x1x16x16xf32, #tpu.memory_space<vmem>>, vector<1x1x16x16xf32>
    %63 = vector.shape_cast %62 : vector<1x1x16x16xf32> to vector<1x16x16xf32>
    %64 = arith.index_cast %c3_i32 : i32 to index
    %65 = memref.load %arg1[%64] : memref<12xf32, #tpu.memory_space<smem>>
    %66 = vector.broadcast %65 : f32 to vector<1x16x16xf32>
    %67 = arith.mulf %66, %63 : vector<1x16x16xf32>
    %68 = arith.addf %48, %67 : vector<1x16x16xf32>
    %c4_i32_15 = arith.constant 4 : i32
    %69 = arith.addi %c4_i32_15, %c3_i32 : i32
    %70 = arith.index_cast %69 : i32 to index
    %71 = memref.load %arg1[%70] : memref<12xf32, #tpu.memory_space<smem>>
    %72 = vector.broadcast %71 : f32 to vector<1x16x16xf32>
    %73 = arith.mulf %72, %63 : vector<1x16x16xf32>
    %74 = arith.addf %54, %73 : vector<1x16x16xf32>
    %c8_i32_16 = arith.constant 8 : i32
    %75 = arith.addi %c8_i32_16, %c3_i32 : i32
    %76 = arith.index_cast %75 : i32 to index
    %77 = memref.load %arg1[%76] : memref<12xf32, #tpu.memory_space<smem>>
    %78 = vector.broadcast %77 : f32 to vector<1x16x16xf32>
    %79 = arith.mulf %78, %63 : vector<1x16x16xf32>
    %80 = arith.addf %60, %79 : vector<1x16x16xf32>
    %c4_i32_17 = arith.constant 4 : i32
    %81 = arith.truncf %68 : vector<1x16x16xf32> to vector<1x16x16xbf16>
    %82 = arith.truncf %74 : vector<1x16x16xf32> to vector<1x16x16xbf16>
    "tpu.trace_start"() <{level = 10 : i32, message = "bwh,buh->bwu"}> : () -> ()
    %cst_18 = arith.constant dense<0.000000e+00> : vector<1x16x16xf32>
    %83 = tpu.matmul %81, %82, %cst_18 {dimension_numbers = #tpu.dot_dimension_numbers<[2], [2], [1], [1], [0, 0, 0, 1, 1, 1], [0], [0]>} : vector<1x16x16xbf16>, vector<1x16x16xbf16>, vector<1x16x16xf32> -> vector<1x16x16xf32>
    "tpu.trace_stop"() : () -> ()
    %cst_19 = arith.constant dense<0xFF800000> : vector<1x16xf32>
    %84 = vector.multi_reduction <maximumf>, %83, %cst_19 [2] : vector<1x16x16xf32> to vector<1x16xf32>
    %85 = vector.shape_cast %84 : vector<1x16xf32> to vector<1x16x1xf32>
    %86 = vector.broadcast %85 : vector<1x16x1xf32> to vector<1x16x16xf32>
    %87 = arith.subf %83, %86 : vector<1x16x16xf32>
    %88 = math.exp %87 : vector<1x16x16xf32>
    %cst_20 = arith.constant dense<0.000000e+00> : vector<1x16xf32>
    %89 = vector.multi_reduction <add>, %88, %cst_20 [2] : vector<1x16x16xf32> to vector<1x16xf32>
    %90 = vector.shape_cast %89 : vector<1x16xf32> to vector<1x16x1xf32>
    %91 = tpu.reciprocal %90 {approx = true} : vector<1x16x1xf32> -> vector<1x16x1xf32>
    %92 = vector.broadcast %91 : vector<1x16x1xf32> to vector<1x16x16xf32>
    %93 = arith.mulf %88, %92 : vector<1x16x16xf32>
    %94 = arith.truncf %93 : vector<1x16x16xf32> to vector<1x16x16xbf16>
    %95 = arith.truncf %80 : vector<1x16x16xf32> to vector<1x16x16xbf16>
    "tpu.trace_start"() <{level = 10 : i32, message = "bwu,buh->bwh"}> : () -> ()
    %cst_21 = arith.constant dense<0.000000e+00> : vector<1x16x16xf32>
    %96 = tpu.matmul %94, %95, %cst_21 {dimension_numbers = #tpu.dot_dimension_numbers<[2], [1], [1], [2], [0, 0, 0, 1, 1, 2], [0], [0]>} : vector<1x16x16xbf16>, vector<1x16x16xbf16>, vector<1x16x16xf32> -> vector<1x16x16xf32>
    "tpu.trace_stop"() : () -> ()
    %97 = arith.addf %96, %80 : vector<1x16x16xf32>
    %c0_22 = arith.constant 0 : index
    %c0_23 = arith.constant 0 : index
    %c0_24 = arith.constant 0 : index
    %98 = vector.load %arg3[%c0_22, %c0_23, %c0_24] : memref<1x16x16xf32, #tpu.memory_space<vmem>>, vector<1x16x16xf32>
    tpu.vector_store %arg3[%c0_22, %c0_23, %c0_24], %97 {strides = array<i32>} : memref<1x16x16xf32, #tpu.memory_space<vmem>>, vector<1x16x16xf32>,
    return
  }
  func.func @transform_0(%arg0: i32) -> i32 {
    %c0_i32 = arith.constant 0 : i32
    %c0_i32_0 = arith.constant 0 : i32
    return %c0_i32 : i32
  }
  func.func @transform_1(%arg0: i32) -> (i32, i32, i32, i32) {
    %c0_i32 = arith.constant 0 : i32
    %c0_i32_0 = arith.constant 0 : i32
    %c0_i32_1 = arith.constant 0 : i32
    %c0_i32_2 = arith.constant 0 : i32
    return %c0_i32, %arg0, %c0_i32_0, %c0_i32_1 : i32, i32, i32, i32
  }
  func.func @transform_2(%arg0: i32) -> (i32, i32, i32) {
    %c0_i32 = arith.constant 0 : i32
    %c0_i32_0 = arith.constant 0 : i32
    %c0_i32_1 = arith.constant 0 : i32
    return %arg0, %c0_i32, %c0_i32_0 : i32, i32, i32
  }
}

</mosaic_0001>

<bundles_post_ra>
// kernel: spatial_attention.1
= control target key start
LH: loop header
LB: loop body
LE: loop exit
PB: predicated region body
PF: predicated region fallthrough
CT: control target
= control target key end

     0   :  { %7 = vsyncpa [#allocation4], 0  ;;  %s943_s0 = inlined_call_operand.vmem [shape: f32[12], index: 0, kind: input, shape index: {}]   ;;  %s944_s1 = inlined_call_operand.vmem [shape: f32[4,2,16,16], index: 1, kind: input, shape index: {}]   ;;  %s945_s2 = inlined_call_operand.hbm [shape: f32[2,16,16], index: 2, kind: output, shape index: {}]  }
   0x1   :  { %8 = vsyncpa [#allocation3], 0 }
   0x2   :  { %10 = vsyncpa [#allocation3 + $0x1], 0  ;;  %s736_s9 = smov 0   ;;  %s738_s10 = smov 0  }
   0x3   :  { %s740_s11 = smov 0   ;;  %s742_s12 = smov 0  }
   0x4 LB: > { %s757_s13 = sadd.s32 4294967295, %s713_s12   ;;  %s517_s14 = sadd.s32 4294967294, %s713_s12   ;;  %s713_s12 = sphi %s742_s12, %s956_s12   ;;  %s709_s11 = sphi %s740_s11, %s955_s11   ;;  %s705_s10 = sphi %s738_s10, %s954_s10   ;;  %s701_s9 = sphi %s736_s9, %s953_s9  }
   0x5   : > { %s761_s15 = sadd.s32 1, %s713_s12   ;;  %s44_s16 = sadd.s32 1, %s709_s11 }
   0x6   : > { %s41_s17 = ssub.s32 %s713_s12, %s761_s15  ;;  %p51_p0 = scmp.ne.s32.totalorder %s709_s11, %s705_s10 }
   0x7   : > { %p42_p1 = scmp.eq.s32.totalorder %s41_s17, 0  ;;  %p52_p2 = scmp.eq.s32.totalorder %s713_s12, 0 }
   0x8   : > { %p81_p3 = scmp.eq.s32.totalorder %s757_s13, 1  ;;  %p86_p4 = scmp.ne.s32.totalorder %s705_s10, %s701_s9 }
   0x9   : > { %s773_s18 = scalar_select %p42_p1, %s709_s11, %s44_s16  }
   0xa   : > { %p775_p5 = por %p52_p2, %p51_p0  ;;  %p779_p6 = por %p81_p3, %p51_p0 }
   0xb   : > { %p87_p7 = scmp.eq.s32.totalorder %s517_s14, 1  ;;  %p518_p8 = scmp.ge.s32.totalorder %s713_s12, 1 }
   0xc   : > { %s948_s20 = scalar_select %p779_p6, 1, 0 }
   0xd   : > { %p94_p9 = scmp.lt.s32.totalorder %s713_s12, 3  ;;  %p785_p10 = por %p87_p7, %p86_p4 }
   0xe   : > { %p584_p11 = scmp.eq.s32.totalorder %s757_s13, 0  ;;  %s107_s25 = sshll.u32 %s943_s0, 4  ;;  %s108_s25 = int_to_ptr.vmem [resolvable:$true] %s107_s25 }
   0xf   : > { %s949_s21 = scalar_select %p785_p10, 1, 0 }
  0x10   : > { %p790_p12 = pnand %p518_p8, %p94_p9  ;;  %s632_s26 = scalar_lea.vmem %s108_s25, 16 }
  0x11   : > { %p633_p1 = scmp.ne.s32.totalorder %s108_s25, %s632_s26  ;;  %p640_p7 = scmp.lt.s32.totalorder %s108_s25, %s108_s25 }
  0x12   : > { %p576_p13 = pneg %p790_p12  ;;  %p641_p8 = scmp.lt.s32.totalorder %s632_s26, %s632_s26 }
  0x14   : > { %p577_p0 = pnand %p584_p11, %p576_p13  ;;  %p642_p9 = por %p641_p8, %p640_p7 }
  0x16   : > { %p634_p2 = pneg %p577_p0 }
  0x18   : > { %p635_p3 = pnand %p634_p2, %p633_p1 }
  0x1a   : > { %p636_p4 = pneg %p635_p3 }
  0x1c   : > { %p643_p10 = pnand %p642_p9, %p636_p4 }
  0x1e   : > { %646 = shalt.err (!%p643_p10)
}
  0x1f   : > { %s715_s27 = smov [#allocation2]   ;;  %p520_p6 = scmp.ge.s32.totalorder %s713_s12, 2 }
  0x20   : > { %579 = dma.vmem_to_smem (!%p577_p0), %s108_s25, 16, %s715_s27, [#allocation4]  }
  0x21   : > { %114 = sbr.rel (%p520_p6) target bundleno = 48 (0x30), region = 20 }
  0x28   : > { %117 = sbr.rel (!%p775_p5) target bundleno = 48 (0x30), region = 24  ;;  %s119_s28 = sand.u32 (%p775_p5), 1, %s709_s11  }
  0x29   : > { %s552_s29 = sshll.u32 (%p775_p5), %s713_s12, 4  ;;  %s521_s30 = sshll.u32 (%p775_p5), %s119_s28, 6 }
  0x2a   : > { %s124_s5 = scalar_lea.vmem (%p775_p5), %s944_s1, %s552_s29  ;;  %s121_s6 = scalar_lea.vmem (%p775_p5), [#allocation5], %s521_s30 }
  0x2b   : > { %v166_v0 = vld [vmem:[%s124_s5] sm:$0xff] (%p775_p5)  ;;  %v168_v1 = vld [vmem:[%s124_s5 + $0x8] sm:$0xff] (%p775_p5) }
  0x2c   : > { %v170_v2 = vld [vmem:[%s124_s5 + $0x20] sm:$0xff] (%p775_p5)  ;;  %167 = vst [vmem:[%s121_s6] sm:$0xff] (%p775_p5), %v166_v0  ;;  %169 = vst [vmem:[%s121_s6 + $0x8] sm:$0xff] (%p775_p5), %v168_v1  ;;  %v172_v3 = vld [vmem:[%s124_s5 + $0x28] sm:$0xff] (%p775_p5) }
  0x2d   : > { %171 = vst [vmem:[%s121_s6 + $0x10] sm:$0xff] (%p775_p5), %v170_v2  ;;  %v174_v4 = vld [vmem:[%s124_s5 + $0x40] sm:$0xff] (%p775_p5)  ;;  %v176_v5 = vld [vmem:[%s124_s5 + $0x48] sm:$0xff] (%p775_p5)  ;;  %173 = vst [vmem:[%s121_s6 + $0x18] sm:$0xff] (%p775_p5), %v172_v3 }
  0x2e   : > { %175 = vst [vmem:[%s121_s6 + $0x20] sm:$0xff] (%p775_p5), %v174_v4  ;;  %177 = vst [vmem:[%s121_s6 + $0x28] sm:$0xff] (%p775_p5), %v176_v5  ;;  %v178_v6 = vld [vmem:[%s124_s5 + $0x60] sm:$0xff] (%p775_p5)  ;;  %v180_v7 = vld [vmem:[%s124_s5 + $0x68] sm:$0xff] (%p775_p5) }
  0x2f   : > { %179 = vst [vmem:[%s121_s6 + $0x30] sm:$0xff] %v178_v6  ;;  %181 = vst [vmem:[%s121_s6 + $0x38] sm:$0xff] %v180_v7 }
  0x30 PF: > { %190 = sbr.rel (%p790_p12) target bundleno = 850 (0x352), region = 62 }
  0x37   : > { %692 = dma.done.wait (%p584_p11), [#allocation4], 16  }
  0x38   : > { %694 = vsyncadd (%p584_p11), [#allocation4], 4294967280  ;;  %s818_s7 = sand.u32 1, %s705_s10  }
  0x39   : > { %s526_s8 = sshll.u32 %s818_s7, 6 }
  0x3a   : > { %s821_s14 = scalar_lea.vmem [#allocation5], %s526_s8 }
  0x3b   : > { %203 = sfence }
  0x3c   : > { %s222_s16 = sld [smem:[#allocation2]]  ;;  %v716_v8 = vmov 0.0   ;;  %s528_s17 = sld [smem:[#allocation2 + $0x4]]  ;;  %v832_v9 = vld [vmem:[%s821_s14] sm:$0xff]  ;;  %v835_v10 = vld [vmem:[%s821_s14 + $0x8] sm:$0xff]  ;;  %vm717_vm0 = vmmov 0  }
  0x3d   : > { %558 = vmatprep.subr.bf16.mxu0 %v716_v8  ;;  %s532_s19 = sld [smem:[#allocation2 + $0x1]]  ;;  %564 = vmatprep.subr.bf16.mxu1 %v716_v8  ;;  %s533_s22 = sld [smem:[#allocation2 + $0x5]]  ;;  %v839_v14 = vld [vmem:[%s821_s14 + $0x10] sm:$0xff]  ;;  %v842_v15 = vld [vmem:[%s821_s14 + $0x18] sm:$0xff]  ;;  %v849_v21 = vld [vmem:[%s821_s14 + $0x20] sm:$0xff]  ;;  %vm305_vm1 = vcmask 130048  }
  0x3e   : > { %s823_s23 = sld [smem:[#allocation2 + $0x2]]  ;;  %s825_s24 = sld [smem:[#allocation2 + $0x6]]  ;;  %560 = vmatprep.mubr.msk.bf16.mxu0 %vm717_vm0, %v716_v8  ;;  %566 = vmatprep.mubr.msk.bf16.mxu1 %vm717_vm0, %v716_v8  ;;  %v852_v22 = vld [vmem:[%s821_s14 + $0x28] sm:$0xff]  ;;  %v860_v29 = vld [vmem:[%s821_s14 + $0x30] sm:$0xff]  ;;  %v863_v30 = vld [vmem:[%s821_s14 + $0x38] sm:$0xff] }
  0x3f   : > { %s827_s25 = sld [smem:[#allocation2 + $0x3]]  ;;  %s829_s26 = sld [smem:[#allocation2 + $0x7]] }
  0x40   : > { %s529_s27 = sld [smem:[#allocation2 + $0x8]]  ;;  %s534_s28 = sld [smem:[#allocation2 + $0x9]] }
  0x41   : > { %s539_s29 = sld [smem:[#allocation2 + $0xa]]  ;;  %s544_s30 = sld [smem:[#allocation2 + $0xb]] }
  0x42   : > { %v223_v11 = vstv %s222_s16  ;;  %v229_v13 = vstv %s528_s17  ;;  %s527_s3 = sshll.u32 %s818_s7, 4  ;;  %s553_s6 = sshll.u32 %s757_s13, 8 }
  0x43   : > { %v224_v12 = vmul.f32 %v223_v11, %v832_v9  ;;  %v244_v16 = vstv %s532_s19  ;;  %v225_v17 = vmul.f32 %v223_v11, %v835_v10  ;;  %v230_v18 = vmul.f32 %v229_v13, %v832_v9  ;;  %s218_s4 = scalar_lea.vmem [#allocation6], %s527_s3  ;;  %s897_s16 = scalar_lea.hbm %s945_s2, %s553_s6 }
  0x44   : > { %v231_v19 = vmul.f32 %v229_v13, %v835_v10  ;;  %v245_v20 = vmul.f32 %v839_v14, %v244_v16  ;;  %v246_v23 = vmul.f32 %v842_v15, %v244_v16  ;;  %v250_v24 = vstv %s533_s22  ;;  %s437_s5 = sshll.u32 %s218_s4, 4  ;;  %s424_s13 = scalar_lea.sflag [#allocation3], %s818_s7  ;;  %s892_s5 = int_to_ptr.vmem [resolvable:$true] %s437_s5 }
  0x45   : > { %v265_v25 = vstv %s823_s23  ;;  %v271_v26 = vstv %s825_s24  ;;  %v251_v27 = vmul.f32 %v839_v14, %v250_v24  ;;  %v252_v28 = vmul.f32 %v842_v15, %v250_v24  ;;  %s647_s17 = scalar_lea.vmem %s892_s5, 256  ;;  %p951_p10 = scmp.ne.s32.totalorder %s948_s20, 0 }
  0x46   : > { %v286_v31 = vstv %s827_s25  ;;  %v266_v32 = vmul.f32 %v849_v21, %v265_v25  ;;  %v267_v33 = vmul.f32 %v852_v22, %v265_v25  ;;  %v272_v34 = vmul.f32 %v849_v21, %v271_v26  ;;  %p648_p5 = scmp.ne.s32.totalorder %s892_s5, %s647_s17  ;;  %s718_s19 = smov [#allocation6]  }
  0x47   : > { %v273_v35 = vmul.f32 %v852_v22, %v271_v26  ;;  %v253_v36 = vadd.f32 %v251_v27, %v230_v18  ;;  %v254_v37 = vadd.f32 %v252_v28, %v231_v19  ;;  %v292_v38 = vstv %s829_s26  ;;  %s651_s22 = sshll.u32 %s718_s19, 4  ;;  %s652_s22 = int_to_ptr.vmem [resolvable:$false] %s651_s22 }
  0x48   : > { %v247_v39 = vadd.f32 %v245_v20, %v224_v12  ;;  %v293_v40 = vmul.f32 %v860_v29, %v292_v38  ;;  %v294_v41 = vmul.f32 %v863_v30, %v292_v38  ;;  %v248_v42 = vadd.f32 %v246_v23, %v225_v17  ;;  %p649_p11 = pnand %p648_p5, %p951_p10  ;;  %s653_s23 = scalar_lea.vmem %s652_s22, 512 }
  0x49   : > { %v274_v43 = vadd.f32 %v272_v34, %v253_v36  ;;  %v275_v44 = vadd.f32 %v273_v35, %v254_v37  ;;  %v287_v45 = vmul.f32 %v860_v29, %v286_v31  ;;  %v288_v46 = vmul.f32 %v863_v30, %v286_v31  ;;  %p654_p13 = scmp.lt.s32.totalorder %s892_s5, %s652_s22  ;;  %p655_p0 = scmp.lt.s32.totalorder %s653_s23, %s647_s17 }
  0x4a   : > { %v268_v49 = vadd.f32 %v266_v32, %v247_v39  ;;  %v269_v50 = vadd.f32 %v267_v33, %v248_v42  ;;  %v235_v8 = vstv %s529_s27  ;;  %v256_v11 = vstv %s534_s28  ;;  %p650_p12 = pneg %p649_p11 }
  0x4b   : > { %v295_v47 = vadd.f32 %v293_v40, %v274_v43  ;;  %v296_v48 = vadd.f32 %v294_v41, %v275_v44  ;;  %v236_v12 = vmul.f32 %v235_v8, %v832_v9  ;;  %v237_v13 = vmul.f32 %v235_v8, %v835_v10  ;;  %p656_p1 = por %p655_p0, %p654_p13 }
  0x4c   : > { %v289_v53 = vadd.f32 %v287_v45, %v268_v49  ;;  %v290_v54 = vadd.f32 %v288_v46, %v269_v50  ;;  %v257_v16 = vmul.f32 %v839_v14, %v256_v11  ;;  %v258_v17 = vmul.f32 %v842_v15, %v256_v11 }
  0x4d   : > { %v304_v51 = vpack.c.bf16 %v296_v48, %v295_v47  ;;  %v277_v18 = vstv %s539_s29  ;;  %v298_v25 = vstv %s544_s30  ;;  %p657_p2 = pnand %p656_p1, %p650_p12 }
  0x4e   : > { %v303_v55 = vpack.c.bf16 %v290_v54, %v289_v53  ;;  %v259_v19 = vadd.f32 %v257_v16, %v236_v12  ;;  %v260_v20 = vadd.f32 %v258_v17, %v237_v13  ;;  %v278_v23 = vmul.f32 %v849_v21, %v277_v18 }
  0x4f   : > { %v310_v52 = vsel %vm305_vm1, %v304_v51, 0  ;;  %v279_v24 = vmul.f32 %v852_v22, %v277_v18  ;;  %v299_v28 = vmul.f32 %v860_v29, %v298_v25  ;;  %v300_v9 = vmul.f32 %v863_v30, %v298_v25 }
  0x50   : > { %559 = vmatpush3.bf16.xpose.msra.mxu0 %v310_v52  ;;  %v280_v26 = vadd.f32 %v278_v23, %v259_v19 }
  0x51   : > { %v281_v27 = vadd.f32 %v279_v24, %v260_v20 }
  0x52   : > { %v301_v10 = vadd.f32 %v299_v28, %v280_v26 }
  0x53   : > { %v302_v31 = vadd.f32 %v300_v9, %v281_v27 }
  0x55   : > { %v376_v14 = vpack.c.bf16 %v302_v31, %v301_v10 }
  0x57   : > { %561 = vmatmul.mubr.msk.bf16.vlgmr.msra.gmra.mrb[0].mxu0 %vm305_vm1, %v303_v55  ;;  %565 = vmatpush3.bf16.msra.mxu1 %v376_v14 }
 0x12a   : > { %v346_v56 = vpop.f32.mrb[0].mxu0 }
 0x12b   : > { %v562_v57 = vpop.f32.mrb[1].mxu0  ;;  %v353_v58 = vsel %vm305_vm1, %v346_v56, -inf }
 0x12c   : > { %354 = vmax.xlane.f32.xlu0 %v353_v58  ;;  %v349_v59 = vpop.f32.mrb[2].mxu0 }
 0x12d   : > { %v563_v60 = vpop.f32.mrb[3].mxu0  ;;  %v356_v61 = vsel %vm305_vm1, %v349_v59, -inf }
 0x130   : > { %357 = vmax.xlane.f32.xlu0 %v356_v61 }
 0x1b9   : > { %v355_v62 = vpop.xlane.xlu0 %354 }
 0x1ba   : > { %v359_v63 = vsub.f32 %v346_v56, %v355_v62 }
 0x1bc   : > { %v361_v0 = vmul.f32 1.442695, %v359_v63 }
 0x1bd   : > { %v358_v1 = vpop.xlane.xlu0 %357 }
 0x1be   : > { %624 = vpow2.f32 %v361_v0  ;;  %v360_v2 = vsub.f32 %v349_v59, %v358_v1 }
 0x1c0   : > { %v363_v3 = vmul.f32 1.442695, %v360_v2 }
 0x1c2   : > { %626 = vpow2.f32 %v363_v3 }
 0x1c8   : > { %v625_v4 = vpop.eup %624 }
 0x1c9   : > { %v365_v5 = vsel %vm305_vm1, %v625_v4, 0.0 }
 0x1ca   : > { %366 = vadd.xlane.f32.xlu1 %v365_v5 }
 0x1cc   : > { %v627_v6 = vpop.eup %626 }
 0x1cd   : > { %v368_v7 = vsel %vm305_vm1, %v627_v6, 0.0 }
 0x1ce   : > { %369 = vadd.xlane.f32.xlu1 %v368_v7 }
 0x257   : > { %v367_v15 = vpop.xlane.xlu1 %366 }
 0x258   : > { %628 = vrcp.f32 %v367_v15 }
 0x25b   : > { %v370_v32 = vpop.xlane.xlu1 %369 }
 0x25c   : > { %630 = vrcp.f32 %v370_v32 }
 0x262   : > { %v629_v21 = vpop.eup %628 }
 0x263   : > { %v373_v22 = vmul.f32 %v629_v21, %v625_v4 }
 0x266   : > { %v631_v33 = vpop.eup %630 }
 0x267   : > { %v374_v34 = vmul.f32 %v631_v33, %v627_v6 }
 0x269   : > { %v375_v35 = vpack.c.bf16 %v374_v34, %v373_v22 }
 0x26b   : > { %567 = vmatmul.mubr.msk.bf16.vlgmr.msra.gmra.mrb[0].mxu1 %vm305_vm1, %v375_v35 }
 0x33e   : > { %v414_v29 = vpop.f32.mrb[0].mxu1 }
 0x33f   : > { %v415_v30 = vadd.f32 %v414_v29, %v301_v10  ;;  %v568_v36 = vpop.f32.mrb[1].mxu1 }
 0x340   : > { %v417_v37 = vpop.f32.mrb[2].mxu1 }
 0x341   : > { %421 = vst.msk [vmem:[%s218_s4] sm:$0xff] %vm305_vm1, %v415_v30  ;;  %v418_v38 = vadd.f32 %v417_v37, %v302_v31  ;;  %v569_v39 = vpop.f32.mrb[3].mxu1 }
 0x343   : > { %422 = vst.msk [vmem:[%s218_s4 + $0x8] sm:$0xff] %vm305_vm1, %v418_v38 }
 0x344   : > { %660 = shalt.err (!%p657_p2)
}
 0x345   : > { %s661_s24 = scalar_lea.hbm %s897_s16, 256  ;;  %s665_s27 = scalar_lea.hbm %s945_s2, 512 }
 0x346   : > { %p662_p3 = scmp.ne.s32.totalorder %s897_s16, %s661_s24  ;;  %p666_p8 = scmp.lt.u32.totalorder %s897_s16, %s945_s2 }
 0x347   : > { %p667_p9 = scmp.lt.u32.totalorder %s665_s27, %s661_s24  ;;  %p669_p11 = scmp.lt.u32.totalorder %s661_s24, %s897_s16 }
 0x348   : > { %p663_p4 = pnand %p662_p3, %p951_p10 }
 0x349   : > { %p668_p5 = por %p667_p9, %p666_p8 }
 0x34a   : > { %p664_p7 = pneg %p663_p4 }
 0x34b   : > { %p670_p12 = por %p669_p11, %p668_p5 }
 0x34d   : > { %p671_p13 = pnand %p670_p12, %p664_p7 }
 0x34f   : > { %674 = shalt.err (!%p671_p13)
}
 0x350   : > { %s719_s30 = smov 128   ;;  %s720_s3 = smov 8  }
 0x351   : > { %574 = dma.vmem_to_hbm [thread:$0]  (%p951_p10), %s892_s5, 256, %s897_s16, %s424_s13, %s719_s30, %s719_s30, %s720_s3  }
 0x352 PF: > { %s452_s4 = sand.u32 1, %s701_s9   ;;  %p952_p0 = scmp.ne.s32.totalorder %s949_s21, 0 }
 0x353   : > { %s453_s6 = scalar_lea.sflag [#allocation3], %s452_s4 }
 0x354   : > { %p581_p1 = pnand %p520_p6, %p952_p0 }
 0x356   : > { %696 = dma.done.wait (!%p581_p1), %s453_s6, 256  }
 0x357   : > { %698 = vsyncadd (!%p581_p1), %s453_s6, 4294967040  ;;  %p13_p2 = scmp.ge.s32.totalorder %s761_s15, 4   ;;  %s953_s9 = smov %s705_s10 }
 0x358   : > { %s954_s10 = smov %s709_s11  ;;  %s955_s11 = smov %s773_s18 }
 0x359   : > { %s956_s12 = smov %s761_s15  ;;  %15 = sbr.rel (!%p13_p2) target bundleno = 4 (0x4), region = 114 }
 0x360   :  { %458 = vsyncpa [#allocation3], 1 }
 0x361   :  { %460 = vsyncpa [#allocation3 + $0x1], 1 }
 0x362   :  { %461 = vsyncpa [#allocation4], 1 }
 0x363   :  { %463 = vsyncpa [#allocation4 + $0x1], 1 }

</bundles_post_ra>
